<compile_context>
chip_gen: v5e
topology: v5e:2x2
jax: 0.10.0
libtpu: 0.0.40
codegen_flags: <defaults>
</compile_context>

<pallas_src>
import functools

import jax
import jax.numpy as jnp
import numpy as np
from jax import lax
from jax.experimental import pallas as pl
from jax.experimental.pallas import tpu as pltpu


# ----------------------------------------------------------------------------- helpers

def _vmem_limit_bytes():
    """Scoped-VMEM limit derived from the actual device (25% headroom), not hard-coded."""
    try:
        cap = pltpu.get_tpu_info().vmem_capacity_bytes   # 128 MiB v5e/v6e, 64 MiB v7x
    except Exception:
        cap = 64 * 1024 * 1024
    return min(int(cap * 3 // 4), 128 * 1024 * 1024)


def _pick_batch_chunk(N, C, C_out, HWp, KK, budget=8 * 1024 * 1024):
    """Largest batch chunk NB whose rough VMEM footprint stays under `budget`.

    Prefers a single grid step (NB=N): at small sizes the ~0.35 us per-step pipeline overhead
    dominates, and the v7x dual-TC 'parallel' split only pays off once per-core work is well
    above that.  When chunking, NB must keep block rows (8,128)-aligned."""
    def footprint(nb):
        # double-buffered in/out blocks + folded weight*mask block + f32 working copies
        return 4 * HWp * (2 * nb * C + (2 + KK + 2) * nb * C_out)

    if footprint(N) <= budget:
        return N, 1
    for nb in range(N - 1, 0, -1):
        if N % nb:
            continue
        if (nb * C) % 8 or (nb * C_out) % 8:
            continue
        if footprint(nb) <= budget:
            return nb, N // nb
    return N, 1   # no aligned divisor fits: single big step, rely on the raised VMEM limit


# ----------------------------------------------------------------------------- kernel

def _dw_roll_kernel(x_ref, wm_ref, b_ref, o_ref, *, shifts, HWp, dm):
    # x_ref : (NB*C,        HWp) VMEM   one batch chunk, all input channels, flat spatial lanes
    # wm_ref: (K*K, NB*C_out, HWp) VMEM weight * zero-padding-mask, pre-folded on the host
    # b_ref : (NB*C_out, 1)       VMEM  bias column
    # o_ref : (NB*C_out, HWp)     VMEM  lane-dense output slab
    x = x_ref[...].astype(jnp.float32)                    # f32 cast hoisted out of the tap loop
    if dm > 1:
        # == jnp.repeat(x, dm, axis=0): row order (n, c, d) matches output rows (n, c*dm + d).
        r, hw = x.shape
        x = jnp.broadcast_to(x[:, None, :], (r, dm, hw)).reshape(r * dm, hw)

    # Accumulator starts at the bias (one hoisted broadcast; saves a full-tile add at the end).
    acc = jnp.broadcast_to(b_ref[...].astype(jnp.float32), o_ref.shape)
    for t, shift in enumerate(shifts):
        amt = (-shift) % HWp
        # out[p] needs x[p + shift]; a lane rotation keeps the tap purely element-wise (XLU slot,
        # free under the VALU-bound mul/add).  Wrapped / out-of-image taps are killed because the
        # zero-padding mask was pre-multiplied into wm.
        xs = pltpu.roll(x, amt, axis=1) if amt else x
        acc = acc + wm_ref[t] * xs                        # 1 mul + 1 add per tap (no f32 FMA on VPU)
    o_ref[...] = acc.astype(o_ref.dtype)                  # unmasked lane-dense store


def _run_roll_kernel(x2, wm, bias, *, N, C, dm, shifts, out_dtype):
    """x2: (N*C, HWp) flattened lane-padded input; wm: (K*K, C_out, HWp); -> (N*C_out, HWp)."""
    C_out = C * dm
    KK, _, HWp = wm.shape
    NB, grid_n = _pick_batch_chunk(N, C, C_out, HWp, KK)

    wm_t = jnp.tile(wm, (1, NB, 1))                                        # rows match (n, c_out)
    b_t = jnp.tile(bias.reshape(C_out, 1).astype(jnp.float32), (NB, 1))

    kernel = functools.partial(_dw_roll_kernel, shifts=tuple(shifts), HWp=HWp, dm=dm)
    # NOTE: wm_t / b_t have constant index_maps -> fetched once.  If C*HW ever grows enough to
    # pressure v7x's 64 MiB VMEM, single-buffer them (pipeline_mode=pl.Buffered(1)) and add a
    # channel-tile grid axis rather than shrinking the lane-dense HW block.
    return pl.pallas_call(
        kernel,
        out_shape=jax.ShapeDtypeStruct((N * C_out, HWp), out_dtype),
        grid=(grid_n,),
        in_specs=[
            pl.BlockSpec((NB * C, HWp), lambda i: (i, 0)),
            pl.BlockSpec((KK, NB * C_out, HWp), lambda i: (0, 0, 0)),
            pl.BlockSpec((NB * C_out, 1), lambda i: (0, 0)),
        ],
        out_specs=pl.BlockSpec((NB * C_out, HWp), lambda i: (i, 0)),
        compiler_params=pltpu.CompilerParams(
            dimension_semantics=(("arbitrary",) if grid_n == 1 else ("parallel",)),
            vmem_limit_bytes=_vmem_limit_bytes()),
    )(x2, wm_t, b_t)


# ----------------------------------------------------------------------------- host-side prep

def _tap_masks(H, W, K, padding, dilation, HWp):
    """(K*K, 1, HWp) float32 validity masks: zero padding handled in-kernel (no jnp.pad pass).
    Lanes >= H*W (lane padding) are masked to zero as well."""
    ii, jj = np.meshgrid(np.arange(H), np.arange(W), indexing="ij")
    m = np.zeros((K * K, 1, HWp), np.float32)
    for kh in range(K):
        for kw in range(K):
            dh = kh * dilation - padding
            dw = kw * dilation - padding
            valid = (ii + dh >= 0) & (ii + dh < H) & (jj + dw >= 0) & (jj + dw < W)
            m[kh * K + kw, 0, :H * W] = valid.reshape(-1).astype(np.float32)
    return m


def _fold_weight_mask(weight, K, C_out, masks):
    # Mask is folded into the weight (saves one mul/tap and the per-tap broadcasts).  Invalid
    # taps therefore see w*0 rather than a true zero input, so non-finite garbage would
    # propagate; inputs are assumed finite (use jnp.where(mask, xs, 0) in-kernel otherwise).
    w_col = weight.reshape(C_out, K * K).astype(jnp.float32).T          # (K*K, C_out)
    return w_col[:, :, None] * jnp.asarray(masks)                       # (K*K, C_out, HWp)


# ----------------------------------------------------------------------------- paths

def _dw_same_flat(x, weight, bias, *, K, dm, padding, dilation):
    """Fast path: stride == 1 and output spatial size == input spatial size."""
    N, C, H, W = x.shape
    HW = H * W
    HWp = 128 * pl.cdiv(HW, 128)
    C_out = C * dm

    x2 = x.reshape(N * C, HW)                                           # free reshape (contiguous)
    if HWp != HW:
        x2 = jnp.pad(x2, ((0, 0), (0, HWp - HW)))                       # lane-pad to 128 multiple

    masks = _tap_masks(H, W, K, padding, dilation, HWp)
    wm = _fold_weight_mask(weight, K, C_out, masks)
    # Flat offset of each dilated tap relative to the output position (stride=1, Wo==W).
    shifts = [(kh * dilation - padding) * W + (kw * dilation - padding)
              for kh in range(K) for kw in range(K)]

    out2 = _run_roll_kernel(x2, wm, bias, N=N, C=C, dm=dm, shifts=shifts, out_dtype=x.dtype)
    return out2[:, :HW].reshape(N, C_out, H, W)


def _dw_general(x, weight, bias, *, K, dm, stride, padding, dilation, Ho, Wo):
    """Any stride / output size.  The spatially padded input is flattened at width Wp so every
    dilated tap is still a constant lane shift; stride is applied by subsampling the stride-1
    result in the wrapper (lane-dense stores, no per-channel masked writes, no strided slices
    inside the kernel)."""
    # TODO(synk): stride>1 computes the full stride-1 result then subsamples (stride^2 extra
    # VALU work); a space-to-batch phase split of the input would remove that overhead.
    N, C, H, W = x.shape
    C_out = C * dm
    xp = jnp.pad(x, ((0, 0), (0, 0), (padding, padding), (padding, padding)))
    Hp, Wp = H + 2 * padding, W + 2 * padding
    HWg = Hp * Wp
    HWp = 128 * pl.cdiv(HWg, 128)

    x2 = xp.reshape(N * C, HWg)
    if HWp != HWg:
        x2 = jnp.pad(x2, ((0, 0), (0, HWp - HWg)))

    # Input is already zero padded -> the "mask" only zeroes the lane-padding tail.
    masks = np.zeros((K * K, 1, HWp), np.float32)
    masks[:, :, :HWg] = 1.0
    wm = _fold_weight_mask(weight, K, C_out, masks)
    shifts = [kh * dilation * Wp + kw * dilation for kh in range(K) for kw in range(K)]

    out2 = _run_roll_kernel(x2, wm, bias, N=N, C=C, dm=dm, shifts=shifts, out_dtype=x.dtype)
    y = out2[:, :HWg].reshape(N, C_out, Hp, Wp)
    return y[:, :, 0:(Ho - 1) * stride + 1:stride, 0:(Wo - 1) * stride + 1:stride]


# ----------------------------------------------------------------------------- public entry point

def depthwise_dilation2d(x, weight, bias, *, kernel_size, depth_multiplier=1,
                         stride=1, padding=0, dilation=1):
    """Matches nn.Conv2d(C, C*dm, K, stride, padding, dilation, groups=C)(x), NCHW layout."""
    N, C, H, W = x.shape
    K = kernel_size
    dm = depth_multiplier
    Ho = (H + 2 * padding - dilation * (K - 1) - 1) // stride + 1
    Wo = (W + 2 * padding - dilation * (K - 1) - 1) // stride + 1

    if stride == 1 and Ho == H and Wo == W:
        return _dw_same_flat(x, weight, bias, K=K, dm=dm, padding=padding, dilation=dilation)
    return _dw_general(x, weight, bias, K=K, dm=dm, stride=stride, padding=padding,
                       dilation=dilation, Ho=Ho, Wo=Wo)


# ----------------------------------------------------------------------------- test

def _reference(x, weight, bias, *, stride, padding, dilation, groups):
    return lax.conv_general_dilated(
        x, weight,
        window_strides=(stride, stride),
        padding=[(padding, padding), (padding, padding)],
        rhs_dilation=(dilation, dilation),
        dimension_numbers=("NCHW", "OIHW", "NCHW"),
        feature_group_count=groups,
    ) + bias[None, :, None, None]


def _check(N, C, H, W, K, dm, stride, padding, dilation, seed):
    key = jax.random.PRNGKey(seed)
    kx, kw, kb = jax.random.split(key, 3)
    C_out = C * dm
    x = jax.random.normal(kx, (N, C, H, W), dtype=jnp.float32)
    weight = jax.random.normal(kw, (C_out, 1, K, K), dtype=jnp.float32) * 0.1
    bias = jax.random.normal(kb, (C_out,), dtype=jnp.float32) * 0.1

    out = depthwise_dilation2d(x, weight, bias, kernel_size=K, depth_multiplier=dm,
                               stride=stride, padding=padding, dilation=dilation)
    out = jax.block_until_ready(out)
    ref = _reference(x, weight, bias, stride=stride, padding=padding, dilation=dilation, groups=C)
    np.testing.assert_allclose(np.asarray(out), np.asarray(ref), rtol=1e-5, atol=1e-5)


if __name__ == "__main__":
    # Module config: in_channels=4, kernel_size=3, depth_multiplier=2, stride=1,
    # padding=2, dilation=2 -> "same" 16x16 output.  Fast (roll/mask) path.
    _check(N=2, C=4, H=16, W=16, K=3, dm=2, stride=1, padding=2, dilation=2, seed=0)
    # Fast path with a non-128-multiple spatial size (exercises the relaxed lane-pad gate).
    _check(N=2, C=3, H=14, W=14, K=3, dm=1, stride=1, padding=1, dilation=1, seed=0)
    # Strided config -> general fallback (same lane-dense kernel + wrapper subsampling).
    _check(N=2, C=4, H=9, W=9, K=3, dm=2, stride=2, padding=1, dilation=1, seed=0)
    print("KERNEL_OK")
</pallas_src>

<mosaic_0001>
module attributes {stable_mosaic.version = 11 : i64} {
  func.func @_dw_roll_kernel(%arg0: i32, %arg1: memref<8x256xf32, #tpu.memory_space<vmem>>, %arg2: memref<9x16x256xf32, #tpu.memory_space<vmem>>, %arg3: memref<16x1xf32, #tpu.memory_space<vmem>>, %arg4: memref<16x256xf32, #tpu.memory_space<vmem>>) attributes {dimension_semantics = [#tpu.dimension_semantics<arbitrary>], iteration_bounds = array<i64: 1>, scalar_prefetch = 0 : i64, scratch_operands = 0 : i64, tpu.core_type = #tpu.core_type<tc>, window_params = [{transform_indices = @transform_0, window_bounds = array<i64: 8, 256>}, {pipeline_mode = #tpu.pipeline_mode<synchronous>, transform_indices = @transform_1, window_bounds = array<i64: 9, 16, 256>}, {pipeline_mode = #tpu.pipeline_mode<synchronous>, transform_indices = @transform_2, window_bounds = array<i64: 16, 1>}, {transform_indices = @transform_3, window_bounds = array<i64: 16, 256>}]} {
    %c0 = arith.constant 0 : index
    %c0_0 = arith.constant 0 : index
    %0 = vector.load %arg1[%c0, %c0_0] : memref<8x256xf32, #tpu.memory_space<vmem>>, vector<8x256xf32>
    %1 = vector.shape_cast %0 : vector<8x256xf32> to vector<8x1x256xf32>
    %2 = vector.shape_cast %1 : vector<8x1x256xf32> to vector<8x1x256xf32>
    %3 = vector.broadcast %2 : vector<8x1x256xf32> to vector<8x2x256xf32>
    %4 = vector.shape_cast %3 : vector<8x2x256xf32> to vector<16x256xf32>
    %c0_1 = arith.constant 0 : index
    %c0_2 = arith.constant 0 : index
    %5 = vector.load %arg3[%c0_1, %c0_2] : memref<16x1xf32, #tpu.memory_space<vmem>>, vector<16x1xf32>
    %6 = vector.shape_cast %5 : vector<16x1xf32> to vector<16x1xf32>
    %7 = vector.broadcast %6 : vector<16x1xf32> to vector<16x256xf32>
    %c34_i32 = arith.constant 34 : i32
    %8 = tpu.dynamic_rotate %4 by %c34_i32 dim 1 : vector<16x256xf32>, i32 -> vector<16x256xf32>
    %c0_3 = arith.constant 0 : index
    %c0_4 = arith.constant 0 : index
    %c0_5 = arith.constant 0 : index
    %9 = vector.load %arg2[%c0_3, %c0_4, %c0_5] : memref<9x16x256xf32, #tpu.memory_space<vmem>>, vector<1x16x256xf32>
    %10 = vector.shape_cast %9 : vector<1x16x256xf32> to vector<16x256xf32>
    %11 = arith.mulf %10, %8 : vector<16x256xf32>
    %12 = arith.addf %7, %11 : vector<16x256xf32>
    %c32_i32 = arith.constant 32 : i32
    %13 = tpu.dynamic_rotate %4 by %c32_i32 dim 1 : vector<16x256xf32>, i32 -> vector<16x256xf32>
    %c1 = arith.constant 1 : index
    %c0_6 = arith.constant 0 : index
    %c0_7 = arith.constant 0 : index
    %14 = vector.load %arg2[%c1, %c0_6, %c0_7] : memref<9x16x256xf32, #tpu.memory_space<vmem>>, vector<1x16x256xf32>
    %15 = vector.shape_cast %14 : vector<1x16x256xf32> to vector<16x256xf32>
    %16 = arith.mulf %15, %13 : vector<16x256xf32>
    %17 = arith.addf %12, %16 : vector<16x256xf32>
    %c30_i32 = arith.constant 30 : i32
    %18 = tpu.dynamic_rotate %4 by %c30_i32 dim 1 : vector<16x256xf32>, i32 -> vector<16x256xf32>
    %c2 = arith.constant 2 : index
    %c0_8 = arith.constant 0 : index
    %c0_9 = arith.constant 0 : index
    %19 = vector.load %arg2[%c2, %c0_8, %c0_9] : memref<9x16x256xf32, #tpu.memory_space<vmem>>, vector<1x16x256xf32>
    %20 = vector.shape_cast %19 : vector<1x16x256xf32> to vector<16x256xf32>
    %21 = arith.mulf %20, %18 : vector<16x256xf32>
    %22 = arith.addf %17, %21 : vector<16x256xf32>
    %c2_i32 = arith.constant 2 : i32
    %23 = tpu.dynamic_rotate %4 by %c2_i32 dim 1 : vector<16x256xf32>, i32 -> vector<16x256xf32>
    %c3 = arith.constant 3 : index
    %c0_10 = arith.constant 0 : index
    %c0_11 = arith.constant 0 : index
    %24 = vector.load %arg2[%c3, %c0_10, %c0_11] : memref<9x16x256xf32, #tpu.memory_space<vmem>>, vector<1x16x256xf32>
    %25 = vector.shape_cast %24 : vector<1x16x256xf32> to vector<16x256xf32>
    %26 = arith.mulf %25, %23 : vector<16x256xf32>
    %27 = arith.addf %22, %26 : vector<16x256xf32>
    %c4 = arith.constant 4 : index
    %c0_12 = arith.constant 0 : index
    %c0_13 = arith.constant 0 : index
    %28 = vector.load %arg2[%c4, %c0_12, %c0_13] : memref<9x16x256xf32, #tpu.memory_space<vmem>>, vector<1x16x256xf32>
    %29 = vector.shape_cast %28 : vector<1x16x256xf32> to vector<16x256xf32>
    %30 = arith.mulf %29, %4 : vector<16x256xf32>
    %31 = arith.addf %27, %30 : vector<16x256xf32>
    %c254_i32 = arith.constant 254 : i32
    %32 = tpu.dynamic_rotate %4 by %c254_i32 dim 1 : vector<16x256xf32>, i32 -> vector<16x256xf32>
    %c5 = arith.constant 5 : index
    %c0_14 = arith.constant 0 : index
    %c0_15 = arith.constant 0 : index
    %33 = vector.load %arg2[%c5, %c0_14, %c0_15] : memref<9x16x256xf32, #tpu.memory_space<vmem>>, vector<1x16x256xf32>
    %34 = vector.shape_cast %33 : vector<1x16x256xf32> to vector<16x256xf32>
    %35 = arith.mulf %34, %32 : vector<16x256xf32>
    %36 = arith.addf %31, %35 : vector<16x256xf32>
    %c226_i32 = arith.constant 226 : i32
    %37 = tpu.dynamic_rotate %4 by %c226_i32 dim 1 : vector<16x256xf32>, i32 -> vector<16x256xf32>
    %c6 = arith.constant 6 : index
    %c0_16 = arith.constant 0 : index
    %c0_17 = arith.constant 0 : index
    %38 = vector.load %arg2[%c6, %c0_16, %c0_17] : memref<9x16x256xf32, #tpu.memory_space<vmem>>, vector<1x16x256xf32>
    %39 = vector.shape_cast %38 : vector<1x16x256xf32> to vector<16x256xf32>
    %40 = arith.mulf %39, %37 : vector<16x256xf32>
    %41 = arith.addf %36, %40 : vector<16x256xf32>
    %c224_i32 = arith.constant 224 : i32
    %42 = tpu.dynamic_rotate %4 by %c224_i32 dim 1 : vector<16x256xf32>, i32 -> vector<16x256xf32>
    %c7 = arith.constant 7 : index
    %c0_18 = arith.constant 0 : index
    %c0_19 = arith.constant 0 : index
    %43 = vector.load %arg2[%c7, %c0_18, %c0_19] : memref<9x16x256xf32, #tpu.memory_space<vmem>>, vector<1x16x256xf32>
    %44 = vector.shape_cast %43 : vector<1x16x256xf32> to vector<16x256xf32>
    %45 = arith.mulf %44, %42 : vector<16x256xf32>
    %46 = arith.addf %41, %45 : vector<16x256xf32>
    %c222_i32 = arith.constant 222 : i32
    %47 = tpu.dynamic_rotate %4 by %c222_i32 dim 1 : vector<16x256xf32>, i32 -> vector<16x256xf32>
    %c8 = arith.constant 8 : index
    %c0_20 = arith.constant 0 : index
    %c0_21 = arith.constant 0 : index
    %48 = vector.load %arg2[%c8, %c0_20, %c0_21] : memref<9x16x256xf32, #tpu.memory_space<vmem>>, vector<1x16x256xf32>
    %49 = vector.shape_cast %48 : vector<1x16x256xf32> to vector<16x256xf32>
    %50 = arith.mulf %49, %47 : vector<16x256xf32>
    %51 = arith.addf %46, %50 : vector<16x256xf32>
    %c0_22 = arith.constant 0 : index
    %c0_23 = arith.constant 0 : index
    %52 = vector.load %arg4[%c0_22, %c0_23] : memref<16x256xf32, #tpu.memory_space<vmem>>, vector<16x256xf32>
    tpu.vector_store %arg4[%c0_22, %c0_23], %51 {strides = array<i32>} : memref<16x256xf32, #tpu.memory_space<vmem>>, vector<16x256xf32>,
    return
  }
  func.func @transform_0(%arg0: i32) -> (i32, i32) {
    %c0_i32 = arith.constant 0 : i32
    %c0_i32_0 = arith.constant 0 : i32
    return %arg0, %c0_i32 : i32, i32
  }
  func.func @transform_1(%arg0: i32) -> (i32, i32, i32) {
    %c0_i32 = arith.constant 0 : i32
    %c0_i32_0 = arith.constant 0 : i32
    %c0_i32_1 = arith.constant 0 : i32
    %c0_i32_2 = arith.constant 0 : i32
    return %c0_i32, %c0_i32_0, %c0_i32_1 : i32, i32, i32
  }
  func.func @transform_2(%arg0: i32) -> (i32, i32) {
    %c0_i32 = arith.constant 0 : i32
    %c0_i32_0 = arith.constant 0 : i32
    %c0_i32_1 = arith.constant 0 : i32
    return %c0_i32, %c0_i32_0 : i32, i32
  }
  func.func @transform_3(%arg0: i32) -> (i32, i32) {
    %c0_i32 = arith.constant 0 : i32
    %c0_i32_0 = arith.constant 0 : i32
    return %arg0, %c0_i32 : i32, i32
  }
}

</mosaic_0001>

<bundles_post_ra>
// kernel: tpu_custom_call.1
= control target key start
LH: loop header
LB: loop body
LE: loop exit
PB: predicated region body
PF: predicated region fallthrough
CT: control target
= control target key end

     0   :  { %8 = vsyncpa [#allocation3], 0  ;;  %s908_s0 = inlined_call_operand.vmem [shape: f32[8,256], index: 0, kind: input, shape index: {}]   ;;  %s909_s1 = inlined_call_operand.hbm [shape: f32[9,16,256], index: 1, kind: input, shape index: {}]   ;;  %s910_s2 = inlined_call_operand.vmem [shape: f32[16,1], index: 2, kind: input, shape index: {}]   ;;  %s911_s3 = inlined_call_operand.hbm [shape: f32[16,256], index: 3, kind: output, shape index: {}]  }
   0x1   :  { %9 = vsyncpa [#allocation4], 0  ;;  %s16_s14 = sshll.u32 %s909_s1, 4  ;;  %s622_s15 = smov [#allocation2]   ;;  %s17_s14 = int_to_ptr.hbm [resolvable:$true] %s16_s14 }
   0x2   :  { %s18_s16 = sshll.u32 %s622_s15, 4  ;;  %s623_s17 = smov 256   ;;  %s19_s16 = int_to_ptr.vmem [resolvable:$true] %s18_s16 }
   0x3   :  { %s624_s18 = smov 16  }
   0x4   :  { %24 = dma.hbm_to_vmem [thread:$0]  %s17_s14, 4608, %s19_s16, [#allocation3], %s623_s17, %s623_s17, %s624_s18  }
   0x5   :  { %618 = dma.done.wait [#allocation3], 4608  }
   0x6   :  { %619 = vsyncadd [#allocation3], 4294962688  ;;  %v625_v0 = vmov 0   ;;  %v92_v1 = vld [vmem:[%s910_s2] sm:$0xff]  ;;  %v32_v3 = vld [vmem:[%s908_s0 + $0x8] sm:$0xff]  ;;  %vm36_vm0 = vcmask 1040384  }
   0x7   :  { %569 = vset.pattern.permute.xlu0 %v625_v0  ;;  %v31_v2 = vld [vmem:[%s908_s0] sm:$0xff]  ;;  %vm38_vm1 = vcmask 1041409   ;;  %vm41_vm2 = vcmask 1042434   ;;  %vm44_vm3 = vcmask 1043459   ;;  %v35_v4 = vrot.slane %v32_v3, 7  ;;  %v93_v13 = vld [vmem:[%s910_s2 + $0x8] sm:$0xff] }
   0x8   :  { %96 = vperm.xlu0 %569, %v92_v1   ;;  %vm83_vm4 = vcmask 1041408   ;;  %vm47_vm5 = vcmask 1044484   ;;  %vm50_vm6 = vcmask 1045509   ;;  %vm53_vm7 = vcmask 1046534   ;;  %s626_s2 = smov 34   ;;  %s627_s25 = smov 32  }
   0x9   :  { %vm56_vm8 = vcmask 1046528   ;;  %v37_v5 = vsel %vm36_vm0, %v31_v2, %v35_v4  ;;  %v39_v6 = vsel %vm38_vm1, %v31_v2, %v35_v4  ;;  %v42_v7 = vsel %vm41_vm2, %v31_v2, %v35_v4  ;;  %s628_s26 = smov 30   ;;  %s629_s27 = smov 2  }
   0xa   :  { %v45_v8 = vsel %vm44_vm3, %v31_v2, %v35_v4  ;;  %v40_v9 = vrot.slane %v39_v6, 1  ;;  %v43_v10 = vrot.slane %v42_v7, 2  ;;  %v59_v12 = vperm.slane %v37_v5, 0  ;;  %s630_s28 = smov 126   ;;  %s631_s29 = smov 98  }
   0xb   :  { %v46_v11 = vrot.slane %v45_v8, 3  ;;  %v60_v14 = vperm.slane %v37_v5, 1  ;;  %v48_v15 = vsel %vm47_vm5, %v31_v2, %v35_v4  ;;  %v51_v16 = vsel %vm50_vm6, %v31_v2, %v35_v4  ;;  %s632_s30 = smov 96   ;;  %s633_s4 = smov 94  }
   0xc   :  { %v54_v17 = vsel %vm53_vm7, %v31_v2, %v35_v4  ;;  %v61_v18 = vperm.slane %v40_v9, 0  ;;  %v62_v19 = vperm.slane %v40_v9, 1  ;;  %v63_v20 = vperm.slane %v43_v10, 0  ;;  %s634_s5 = smov [#allocation5]   ;;  %s543_s9 = sshll.u32 %s911_s3, 4  ;;  %s544_s9 = int_to_ptr.hbm [resolvable:$true] %s543_s9 }
   0xd   :  { %v64_v21 = vperm.slane %v43_v10, 1  ;;  %v65_v22 = vperm.slane %v46_v11, 0  ;;  %v66_v23 = vperm.slane %v46_v11, 1  ;;  %v75_v24 = vrot.slane %v60_v14, 6  ;;  %s541_s6 = sshll.u32 %s634_s5, 4  ;;  %s542_s6 = int_to_ptr.vmem [resolvable:$true] %s541_s6 }
   0xe   :  { %v49_v25 = vrot.slane %v48_v15, 4  ;;  %v76_v26 = vrot.slane %v62_v19, 6  ;;  %v52_v28 = vrot.slane %v51_v16, 5  ;;  %v55_v29 = vrot.slane %v54_v17, 6 }
   0xf   :  { %v77_v27 = vrot.slane %v64_v21, 6  ;;  %v78_v30 = vrot.slane %v66_v23, 6  ;;  %v674_v31 = vsel %vm83_vm4, %v59_v12, %v75_v24  ;;  %v57_v32 = vsel %vm56_vm8, %v35_v4, %v31_v2 }
  0x10   :  { %101 = vperm.xlu0 %569, %v93_v13   ;;  %v67_v33 = vperm.slane %v49_v25, 0  ;;  %v678_v34 = vsel %vm83_vm4, %v61_v18, %v76_v26  ;;  %104 = vst [vmem:[#allocation1] ss:$4 sm:$0xff] %v674_v31  ;;  %v58_v36 = vrot.slane %v57_v32, 7  ;;  %v68_v37 = vperm.slane %v49_v25, 1 }
  0x11   :  { %v681_v35 = vsel %vm83_vm4, %v63_v20, %v77_v27  ;;  %v685_v38 = vsel %vm83_vm4, %v65_v22, %v78_v30  ;;  %106 = vst [vmem:[#allocation1 + $0x1] ss:$4 sm:$0xff] %v678_v34  ;;  %v69_v39 = vperm.slane %v52_v28, 0  ;;  %v70_v40 = vperm.slane %v52_v28, 1  ;;  %v142_v30 = vld [vmem:[#allocation2] sm:$0xff] }
  0x12   :  { %v71_v41 = vperm.slane %v55_v29, 0  ;;  %108 = vst [vmem:[#allocation1 + $0x2] ss:$4 sm:$0xff] %v681_v35  ;;  %v72_v42 = vperm.slane %v55_v29, 1  ;;  %v73_v43 = vperm.slane %v58_v36, 0  ;;  %v74_v44 = vperm.slane %v58_v36, 1 }
  0x13   :  { %v79_v45 = vrot.slane %v68_v37, 6  ;;  %110 = vst [vmem:[#allocation1 + $0x3] ss:$4 sm:$0xff] %v685_v38  ;;  %v80_v46 = vrot.slane %v70_v40, 6  ;;  %v135_v26 = vlaneseq  ;;  %v144_v40 = vld [vmem:[#allocation2 + $0x10] sm:$0xff] }
  0x14   :  { %v81_v47 = vrot.slane %v72_v42, 6  ;;  %v82_v48 = vrot.slane %v74_v44, 6 }
  0x15   :  { %v691_v49 = vsel %vm83_vm4, %v67_v33, %v79_v45  ;;  %v694_v50 = vsel %vm83_vm4, %v69_v39, %v80_v46  ;;  %v778_v27 = vand.u32 127, %v135_v26 }
  0x16   :  { %112 = vst [vmem:[#allocation1 + $0x20] ss:$4 sm:$0xff] %v691_v49  ;;  %v698_v51 = vsel %vm83_vm4, %v71_v41, %v81_v47  ;;  %v701_v52 = vsel %vm83_vm4, %v73_v43, %v82_v48  ;;  %v145_v41 = vld [vmem:[#allocation2 + $0x18] sm:$0xff] }
  0x17   :  { %114 = vst [vmem:[#allocation1 + $0x21] ss:$4 sm:$0xff] %v694_v50  ;;  %vm137_vm9 = vcmp.lt.s32.totalorder %v778_v27, 34  ;;  %vm185_vm10 = vcmp.lt.s32.totalorder %v778_v27, 32  ;;  %vm234_vm11 = vcmp.lt.s32.totalorder %v778_v27, 30  ;;  %vm283_vm12 = vcmp.lt.s32.totalorder %v778_v27, 2 }
  0x18   :  { %116 = vst [vmem:[#allocation1 + $0x22] ss:$4 sm:$0xff] %v698_v51  ;;  %vm368_vm13 = vcmp.lt.s32.totalorder %v778_v27, 126  ;;  %vm417_vm14 = vcmp.lt.s32.totalorder %v778_v27, 98  ;;  %vm466_vm15 = vcmp.lt.s32.totalorder %v778_v27, 96  ;;  %vm515_vm0 = vcmp.lt.s32.totalorder %v778_v27, 94 }
  0x19   :  { %118 = vst [vmem:[#allocation1 + $0x23] ss:$4 sm:$0xff] %v701_v52 }
  0x1a   :  { %v119_v53 = vld.sshfl [vmem:[#allocation1] sm:$0xff pattern:$0x73625140]  ;;  %v120_v54 = vld.sshfl [vmem:[#allocation1 + $0x8] sm:$0xff pattern:$0x73625140] }
  0x1b   :  { %127 = vrot.lane.b32.xlu1 %v119_v53, %s626_s2  ;;  %154 = vst [vmem:[#allocation1] ss:$4 sm:$0xff] %v674_v31  ;;  %131 = vrot.lane.b32.xlu2 %v120_v54, %s626_s2 }
  0x1c   :  { %156 = vst [vmem:[#allocation1 + $0x1] ss:$4 sm:$0xff] %v678_v34 }
  0x1d   :  { %158 = vst [vmem:[#allocation1 + $0x2] ss:$4 sm:$0xff] %v681_v35 }
  0x1e   :  { %160 = vst [vmem:[#allocation1 + $0x3] ss:$4 sm:$0xff] %v685_v38 }
  0x20   :  { %v121_v55 = vld.sshfl [vmem:[#allocation1 + $0x20] sm:$0xff pattern:$0x73625140]  ;;  %v122_v56 = vld.sshfl [vmem:[#allocation1 + $0x28] sm:$0xff pattern:$0x73625140] }
  0x21   :  { %162 = vst [vmem:[#allocation1 + $0x20] ss:$4 sm:$0xff] %v691_v49 }
  0x22   :  { %164 = vst [vmem:[#allocation1 + $0x21] ss:$4 sm:$0xff] %v694_v50 }
  0x23   :  { %166 = vst [vmem:[#allocation1 + $0x22] ss:$4 sm:$0xff] %v698_v51  ;;  %129 = vrot.lane.b32.xlu1 %v121_v55, %s626_s2  ;;  %133 = vrot.lane.b32.xlu2 %v122_v56, %s626_s2 }
  0x24   :  { %168 = vst [vmem:[#allocation1 + $0x23] ss:$4 sm:$0xff] %v701_v52 }
  0x25   :  { %v169_v57 = vld.sshfl [vmem:[#allocation1] sm:$0xff pattern:$0x73625140]  ;;  %v170_v58 = vld.sshfl [vmem:[#allocation1 + $0x8] sm:$0xff pattern:$0x73625140] }
  0x26   :  { %177 = vrot.lane.b32.xlu0 %v169_v57, %s627_s25  ;;  %203 = vst [vmem:[#allocation1] ss:$4 sm:$0xff] %v674_v31 }
  0x27   :  { %205 = vst [vmem:[#allocation1 + $0x1] ss:$4 sm:$0xff] %v678_v34 }
  0x28   :  { %207 = vst [vmem:[#allocation1 + $0x2] ss:$4 sm:$0xff] %v681_v35 }
  0x29   :  { %209 = vst [vmem:[#allocation1 + $0x3] ss:$4 sm:$0xff] %v685_v38 }
  0x2b   :  { %v171_v59 = vld.sshfl [vmem:[#allocation1 + $0x20] sm:$0xff pattern:$0x73625140]  ;;  %v172_v60 = vld.sshfl [vmem:[#allocation1 + $0x28] sm:$0xff pattern:$0x73625140]  ;;  %181 = vrot.lane.b32.xlu2 %v170_v58, %s627_s25 }
  0x2c   :  { %179 = vrot.lane.b32.xlu1 %v171_v59, %s627_s25  ;;  %211 = vst [vmem:[#allocation1 + $0x20] ss:$4 sm:$0xff] %v691_v49 }
  0x2d   :  { %213 = vst [vmem:[#allocation1 + $0x21] ss:$4 sm:$0xff] %v694_v50 }
  0x2e   :  { %215 = vst [vmem:[#allocation1 + $0x22] ss:$4 sm:$0xff] %v698_v51  ;;  %183 = vrot.lane.b32.xlu0 %v172_v60, %s627_s25 }
  0x2f   :  { %217 = vst [vmem:[#allocation1 + $0x23] ss:$4 sm:$0xff] %v701_v52 }
  0x30   :  { %v219_v61 = vld.sshfl [vmem:[#allocation1 + $0x8] sm:$0xff pattern:$0x73625140]  ;;  %v218_v62 = vld.sshfl [vmem:[#allocation1] sm:$0xff pattern:$0x73625140] }
  0x31   :  { %252 = vst [vmem:[#allocation1] ss:$4 sm:$0xff] %v674_v31 }
  0x32   :  { %254 = vst [vmem:[#allocation1 + $0x1] ss:$4 sm:$0xff] %v678_v34 }
  0x33   :  { %256 = vst [vmem:[#allocation1 + $0x2] ss:$4 sm:$0xff] %v681_v35 }
  0x34   :  { %226 = vrot.lane.b32.xlu1 %v218_v62, %s628_s26  ;;  %258 = vst [vmem:[#allocation1 + $0x3] ss:$4 sm:$0xff] %v685_v38 }
  0x36   :  { %v220_v63 = vld.sshfl [vmem:[#allocation1 + $0x20] sm:$0xff pattern:$0x73625140]  ;;  %v221_v0 = vld.sshfl [vmem:[#allocation1 + $0x28] sm:$0xff pattern:$0x73625140]  ;;  %230 = vrot.lane.b32.xlu0 %v219_v61, %s628_s26 }
  0x37   :  { %260 = vst [vmem:[#allocation1 + $0x20] ss:$4 sm:$0xff] %v691_v49  ;;  %228 = vrot.lane.b32.xlu2 %v220_v63, %s628_s26 }
  0x38   :  { %262 = vst [vmem:[#allocation1 + $0x21] ss:$4 sm:$0xff] %v694_v50 }
  0x39   :  { %264 = vst [vmem:[#allocation1 + $0x22] ss:$4 sm:$0xff] %v698_v51 }
  0x3a   :  { %266 = vst [vmem:[#allocation1 + $0x23] ss:$4 sm:$0xff] %v701_v52 }
  0x3b   :  { %v268_v1 = vld.sshfl [vmem:[#allocation1 + $0x8] sm:$0xff pattern:$0x73625140]  ;;  %v267_v2 = vld.sshfl [vmem:[#allocation1] sm:$0xff pattern:$0x73625140] }
  0x3c   :  { %232 = vrot.lane.b32.xlu1 %v221_v0, %s628_s26  ;;  %306 = vst [vmem:[#allocation1] ss:$4 sm:$0xff] %v674_v31 }
  0x3d   :  { %308 = vst [vmem:[#allocation1 + $0x1] ss:$4 sm:$0xff] %v678_v34 }
  0x3e   :  { %310 = vst [vmem:[#allocation1 + $0x2] ss:$4 sm:$0xff] %v681_v35 }
  0x3f   :  { %275 = vrot.lane.b32.xlu2 %v267_v2, %s629_s27  ;;  %312 = vst [vmem:[#allocation1 + $0x3] ss:$4 sm:$0xff] %v685_v38  ;;  %v191_v2 = vld [vmem:[#allocation2 + $0x20] sm:$0xff] }
  0x41   :  { %v269_v3 = vld.sshfl [vmem:[#allocation1 + $0x20] sm:$0xff pattern:$0x73625140]  ;;  %v270_v4 = vld.sshfl [vmem:[#allocation1 + $0x28] sm:$0xff pattern:$0x73625140] }
  0x42   :  { %277 = vrot.lane.b32.xlu0 %v269_v3, %s629_s27  ;;  %314 = vst [vmem:[#allocation1 + $0x20] ss:$4 sm:$0xff] %v691_v49  ;;  %v192_v3 = vld [vmem:[#allocation2 + $0x28] sm:$0xff] }
  0x43   :  { %316 = vst [vmem:[#allocation1 + $0x21] ss:$4 sm:$0xff] %v694_v50 }
  0x44   :  { %318 = vst [vmem:[#allocation1 + $0x22] ss:$4 sm:$0xff] %v698_v51  ;;  %279 = vrot.lane.b32.xlu1 %v268_v1, %s629_s27 }
  0x45   :  { %320 = vst [vmem:[#allocation1 + $0x23] ss:$4 sm:$0xff] %v701_v52 }
  0x46   :  { %v738_v5 = vld.sshfl [vmem:[#allocation1] sm:$0xff pattern:$0x73625140]  ;;  %v740_v6 = vld.sshfl [vmem:[#allocation1 + $0x8] sm:$0xff pattern:$0x73625140] }
  0x47   :  { %281 = vrot.lane.b32.xlu2 %v270_v4, %s629_s27  ;;  %337 = vst [vmem:[#allocation1] ss:$4 sm:$0xff] %v674_v31 }
  0x48   :  { %339 = vst [vmem:[#allocation1 + $0x1] ss:$4 sm:$0xff] %v678_v34 }
  0x49   :  { %341 = vst [vmem:[#allocation1 + $0x2] ss:$4 sm:$0xff] %v681_v35 }
  0x4a   :  { %343 = vst [vmem:[#allocation1 + $0x3] ss:$4 sm:$0xff] %v685_v38 }
  0x4c   :  { %v746_v7 = vld.sshfl [vmem:[#allocation1 + $0x20] sm:$0xff pattern:$0x73625140]  ;;  %v748_v8 = vld.sshfl [vmem:[#allocation1 + $0x28] sm:$0xff pattern:$0x73625140] }
  0x4d   :  { %345 = vst [vmem:[#allocation1 + $0x20] ss:$4 sm:$0xff] %v691_v49 }
  0x4e   :  { %347 = vst [vmem:[#allocation1 + $0x21] ss:$4 sm:$0xff] %v694_v50 }
  0x4f   :  { %349 = vst [vmem:[#allocation1 + $0x22] ss:$4 sm:$0xff] %v698_v51 }
  0x50   :  { %351 = vst [vmem:[#allocation1 + $0x23] ss:$4 sm:$0xff] %v701_v52 }
  0x51   :  { %v352_v9 = vld.sshfl [vmem:[#allocation1] sm:$0xff pattern:$0x73625140]  ;;  %v353_v10 = vld.sshfl [vmem:[#allocation1 + $0x8] sm:$0xff pattern:$0x73625140] }
  0x52   :  { %360 = vrot.lane.b32.xlu0 %v352_v9, %s630_s28  ;;  %386 = vst [vmem:[#allocation1] ss:$4 sm:$0xff] %v674_v31  ;;  %364 = vrot.lane.b32.xlu2 %v353_v10, %s630_s28 }
  0x53   :  { %388 = vst [vmem:[#allocation1 + $0x1] ss:$4 sm:$0xff] %v678_v34 }
  0x54   :  { %390 = vst [vmem:[#allocation1 + $0x2] ss:$4 sm:$0xff] %v681_v35 }
  0x55   :  { %392 = vst [vmem:[#allocation1 + $0x3] ss:$4 sm:$0xff] %v685_v38 }
  0x57   :  { %v354_v11 = vld.sshfl [vmem:[#allocation1 + $0x20] sm:$0xff pattern:$0x73625140]  ;;  %v355_v12 = vld.sshfl [vmem:[#allocation1 + $0x28] sm:$0xff pattern:$0x73625140] }
  0x58   :  { %362 = vrot.lane.b32.xlu1 %v354_v11, %s630_s28  ;;  %394 = vst [vmem:[#allocation1 + $0x20] ss:$4 sm:$0xff] %v691_v49 }
  0x59   :  { %396 = vst [vmem:[#allocation1 + $0x21] ss:$4 sm:$0xff] %v694_v50 }
  0x5a   :  { %398 = vst [vmem:[#allocation1 + $0x22] ss:$4 sm:$0xff] %v698_v51  ;;  %366 = vrot.lane.b32.xlu0 %v355_v12, %s630_s28  ;;  %v240_v12 = vld [vmem:[#allocation2 + $0x40] sm:$0xff] }
  0x5b   :  { %400 = vst [vmem:[#allocation1 + $0x23] ss:$4 sm:$0xff] %v701_v52 }
  0x5c   :  { %v402_v13 = vld.sshfl [vmem:[#allocation1 + $0x8] sm:$0xff pattern:$0x73625140]  ;;  %v401_v14 = vld.sshfl [vmem:[#allocation1] sm:$0xff pattern:$0x73625140] }
  0x5d   :  { %435 = vst [vmem:[#allocation1] ss:$4 sm:$0xff] %v674_v31 }
  0x5e   :  { %437 = vst [vmem:[#allocation1 + $0x1] ss:$4 sm:$0xff] %v678_v34 }
  0x5f   :  { %439 = vst [vmem:[#allocation1 + $0x2] ss:$4 sm:$0xff] %v681_v35 }
  0x60   :  { %409 = vrot.lane.b32.xlu1 %v401_v14, %s631_s29  ;;  %441 = vst [vmem:[#allocation1 + $0x3] ss:$4 sm:$0xff] %v685_v38 }
  0x62   :  { %v403_v15 = vld.sshfl [vmem:[#allocation1 + $0x20] sm:$0xff pattern:$0x73625140]  ;;  %v404_v16 = vld.sshfl [vmem:[#allocation1 + $0x28] sm:$0xff pattern:$0x73625140]  ;;  %413 = vrot.lane.b32.xlu0 %v402_v13, %s631_s29 }
  0x63   :  { %443 = vst [vmem:[#allocation1 + $0x20] ss:$4 sm:$0xff] %v691_v49  ;;  %411 = vrot.lane.b32.xlu2 %v403_v15, %s631_s29  ;;  %v241_v13 = vld [vmem:[#allocation2 + $0x48] sm:$0xff] }
  0x64   :  { %445 = vst [vmem:[#allocation1 + $0x21] ss:$4 sm:$0xff] %v694_v50 }
  0x65   :  { %447 = vst [vmem:[#allocation1 + $0x22] ss:$4 sm:$0xff] %v698_v51 }
  0x66   :  { %449 = vst [vmem:[#allocation1 + $0x23] ss:$4 sm:$0xff] %v701_v52 }
  0x67   :  { %v451_v17 = vld.sshfl [vmem:[#allocation1 + $0x8] sm:$0xff pattern:$0x73625140]  ;;  %v450_v18 = vld.sshfl [vmem:[#allocation1] sm:$0xff pattern:$0x73625140] }
  0x68   :  { %415 = vrot.lane.b32.xlu1 %v404_v16, %s631_s29  ;;  %484 = vst [vmem:[#allocation1] ss:$4 sm:$0xff] %v674_v31  ;;  %v143_v31 = vld [vmem:[#allocation2 + $0x8] sm:$0xff] }
  0x69   :  { %486 = vst [vmem:[#allocation1 + $0x1] ss:$4 sm:$0xff] %v678_v34 }
  0x6a   :  { %488 = vst [vmem:[#allocation1 + $0x2] ss:$4 sm:$0xff] %v681_v35 }
  0x6b   :  { %458 = vrot.lane.b32.xlu2 %v450_v18, %s632_s30  ;;  %490 = vst [vmem:[#allocation1 + $0x3] ss:$4 sm:$0xff] %v685_v38  ;;  %v289_v18 = vld [vmem:[#allocation2 + $0x60] sm:$0xff] }
  0x6d   :  { %v452_v19 = vld.sshfl [vmem:[#allocation1 + $0x20] sm:$0xff pattern:$0x73625140]  ;;  %v453_v20 = vld.sshfl [vmem:[#allocation1 + $0x28] sm:$0xff pattern:$0x73625140] }
  0x6e   :  { %460 = vrot.lane.b32.xlu0 %v452_v19, %s632_s30  ;;  %492 = vst [vmem:[#allocation1 + $0x20] ss:$4 sm:$0xff] %v691_v49  ;;  %v290_v19 = vld [vmem:[#allocation2 + $0x68] sm:$0xff] }
  0x6f   :  { %494 = vst [vmem:[#allocation1 + $0x21] ss:$4 sm:$0xff] %v694_v50 }
  0x70   :  { %496 = vst [vmem:[#allocation1 + $0x22] ss:$4 sm:$0xff] %v698_v51  ;;  %462 = vrot.lane.b32.xlu1 %v451_v17, %s632_s30 }
  0x71   :  { %498 = vst [vmem:[#allocation1 + $0x23] ss:$4 sm:$0xff] %v701_v52 }
  0x72   :  { %v499_v21 = vld.sshfl [vmem:[#allocation1] sm:$0xff pattern:$0x73625140]  ;;  %v500_v23 = vld.sshfl [vmem:[#allocation1 + $0x8] sm:$0xff pattern:$0x73625140] }
  0x73   :  { %464 = vrot.lane.b32.xlu2 %v453_v20, %s632_s30 }
  0x75   :  { %v132_v25 = vpop.permute.xlu2 %131 }
  0x76   :  { %507 = vrot.lane.b32.xlu0 %v499_v21, %s633_s4 }
  0x78   :  { %v501_v22 = vld.sshfl [vmem:[#allocation1 + $0x20] sm:$0xff pattern:$0x73625140]  ;;  %v502_v24 = vld.sshfl [vmem:[#allocation1 + $0x28] sm:$0xff pattern:$0x73625140] }
  0x79   :  { %509 = vrot.lane.b32.xlu1 %v501_v22, %s633_s4  ;;  %v193_v22 = vld [vmem:[#allocation2 + $0x30] sm:$0xff] }
  0x7a   :  { %v97_v28 = vpop.permute.xlu0 %96 }
  0x7b   :  { %511 = vrot.lane.b32.xlu2 %v500_v23, %s633_s4  ;;  %v194_v23 = vld [vmem:[#allocation2 + $0x38] sm:$0xff] }
  0x7d   :  { %v134_v29 = vpop.permute.xlu2 %133 }
  0x7e   :  { %513 = vrot.lane.b32.xlu0 %v502_v24, %s633_s4 }
  0x82   :  { %v102_v39 = vpop.permute.xlu0 %101 }
  0x85   :  { %v182_v43 = vpop.permute.xlu2 %181 }
  0x8d   :  { %v128_v32 = vpop.permute.xlu1 %127 }
  0x8e   :  { %v138_v33 = vsel %vm137_vm9, %v128_v32, %v132_v25  ;;  %v140_v34 = vsel %vm137_vm9, %v132_v25, %v128_v32 }
  0x8f   :  { %v146_v35 = vmul.f32 %v142_v30, %v140_v34  ;;  %v147_v36 = vmul.f32 %v143_v31, %v138_v33  ;;  %v303_v34 = vld [vmem:[#allocation2 + $0x88] sm:$0xff] }
  0x91   :  { %v150_v37 = vadd.f32 %v146_v35, %v97_v28  ;;  %v151_v38 = vadd.f32 %v147_v36, %v97_v28  ;;  %v229_v51 = vpop.permute.xlu2 %228 }
  0x95   :  { %v130_v42 = vpop.permute.xlu1 %129 }
  0x96   :  { %v139_v44 = vsel %vm137_vm9, %v130_v42, %v134_v29  ;;  %v141_v45 = vsel %vm137_vm9, %v134_v29, %v130_v42  ;;  %v242_v42 = vld [vmem:[#allocation2 + $0x50] sm:$0xff] }
  0x97   :  { %v148_v46 = vmul.f32 %v144_v40, %v141_v45  ;;  %v149_v47 = vmul.f32 %v145_v41, %v139_v44 }
  0x98   :  { %v178_v50 = vpop.permute.xlu0 %177 }
  0x99   :  { %v789_v48 = vadd.f32 %v148_v46, %v102_v39  ;;  %v791_v49 = vadd.f32 %v149_v47, %v102_v39  ;;  %v276_v54 = vpop.permute.xlu2 %275  ;;  %v186_v4 = vsel %vm185_vm10, %v178_v50, %v182_v43  ;;  %v188_v9 = vsel %vm185_vm10, %v182_v43, %v178_v50  ;;  %v302_v39 = vld [vmem:[#allocation2 + $0x80] sm:$0xff]  ;;  %v243_v43 = vld [vmem:[#allocation2 + $0x58] sm:$0xff] }
  0x9a   :  { %v195_v16 = vmul.f32 %v191_v2, %v188_v9  ;;  %v196_v17 = vmul.f32 %v192_v3, %v186_v4  ;;  %v375_v2 = vld [vmem:[#allocation2 + $0xa8] sm:$0xff]  ;;  %v423_v4 = vld [vmem:[#allocation2 + $0xc0] sm:$0xff] }
  0x9b   :  { %v424_v9 = vld [vmem:[#allocation2 + $0xc8] sm:$0xff] }
  0x9c   :  { %v199_v30 = vadd.f32 %v195_v16, %v150_v37  ;;  %v200_v31 = vadd.f32 %v196_v17, %v151_v38  ;;  %v330_v37 = vmul.f32 %v740_v6, %v303_v34  ;;  %v304_v38 = vld [vmem:[#allocation2 + $0x90] sm:$0xff]  ;;  %v377_v34 = vld [vmem:[#allocation2 + $0xb8] sm:$0xff] }
  0x9d   :  { %v331_v6 = vmul.f32 %v746_v7, %v304_v38  ;;  %v291_v7 = vld [vmem:[#allocation2 + $0x70] sm:$0xff] }
  0x9e   :  { %v180_v52 = vpop.permute.xlu1 %179 }
  0xa0   :  { %v184_v53 = vpop.permute.xlu0 %183 }
  0xa1   :  { %v793_v57 = vpop.permute.xlu2 %281  ;;  %v187_v24 = vsel %vm185_vm10, %v180_v52, %v184_v53  ;;  %v189_v25 = vsel %vm185_vm10, %v184_v53, %v180_v52  ;;  %v329_v52 = vmul.f32 %v738_v5, %v302_v39 }
  0xa2   :  { %v197_v35 = vmul.f32 %v193_v22, %v189_v25  ;;  %v198_v36 = vmul.f32 %v194_v23, %v187_v24 }
  0xa6   :  { %v227_v55 = vpop.permute.xlu1 %226 }
  0xa8   :  { %v231_v56 = vpop.permute.xlu0 %230 }
  0xa9   :  { %v235_v14 = vsel %vm234_vm11, %v227_v55, %v231_v56  ;;  %v237_v15 = vsel %vm234_vm11, %v231_v56, %v227_v55  ;;  %v201_v56 = vadd.f32 %v197_v35, %v789_v48 }
  0xaa   :  { %v244_v26 = vmul.f32 %v240_v12, %v237_v15  ;;  %v245_v28 = vmul.f32 %v241_v13, %v235_v14  ;;  %v292_v12 = vld [vmem:[#allocation2 + $0x78] sm:$0xff] }
  0xac   :  { %v797_v60 = vpop.permute.xlu2 %364  ;;  %v248_v40 = vadd.f32 %v244_v26, %v199_v30  ;;  %v249_v41 = vadd.f32 %v245_v28, %v200_v31 }
  0xae   :  { %v233_v58 = vpop.permute.xlu1 %232 }
  0xaf   :  { %v236_v44 = vsel %vm234_vm11, %v229_v51, %v233_v58  ;;  %v238_v45 = vsel %vm234_vm11, %v233_v58, %v229_v51  ;;  %v202_v51 = vadd.f32 %v198_v36, %v791_v49  ;;  %v374_v58 = vld [vmem:[#allocation2 + $0xa0] sm:$0xff] }
  0xb0   :  { %v247_v55 = vmul.f32 %v243_v43, %v236_v44 }
  0xb2   :  { %v251_v17 = vadd.f32 %v247_v55, %v202_v51 }
  0xb4   :  { %v795_v59 = vpop.permute.xlu0 %277 }
  0xb5   :  { %v285_v13 = vsel %vm283_vm12, %v795_v59, %v793_v57 }
  0xb6   :  { %v280_v61 = vpop.permute.xlu1 %279  ;;  %v296_v26 = vmul.f32 %v292_v12, %v285_v13  ;;  %v523_v13 = vld [vmem:[#allocation2 + $0x110] sm:$0xff] }
  0xb7   :  { %v284_v20 = vsel %vm283_vm12, %v276_v54, %v280_v61  ;;  %v286_v21 = vsel %vm283_vm12, %v280_v61, %v276_v54  ;;  %v246_v54 = vmul.f32 %v242_v42, %v238_v45  ;;  %v305_v61 = vld [vmem:[#allocation2 + $0x98] sm:$0xff]  ;;  %v521_v45 = vld [vmem:[#allocation2 + $0x100] sm:$0xff] }
  0xb8   :  { %v293_v32 = vmul.f32 %v289_v18, %v286_v21  ;;  %v294_v33 = vmul.f32 %v290_v19, %v284_v20  ;;  %v332_v18 = vmul.f32 %v748_v8, %v305_v61  ;;  %v473_v19 = vld [vmem:[#allocation2 + $0xe8] sm:$0xff]  ;;  %v426_v42 = vld [vmem:[#allocation2 + $0xd8] sm:$0xff] }
  0xb9   :  { %v250_v16 = vadd.f32 %v246_v54, %v201_v56 }
  0xba   :  { %v297_v47 = vadd.f32 %v293_v32, %v248_v40  ;;  %v298_v50 = vadd.f32 %v294_v33, %v249_v41  ;;  %v300_v32 = vadd.f32 %v296_v26, %v251_v17  ;;  %v376_v33 = vld [vmem:[#allocation2 + $0xb0] sm:$0xff] }
  0xbb   :  { %v425_v40 = vld [vmem:[#allocation2 + $0xd0] sm:$0xff] }
  0xbc   :  { %v333_v14 = vadd.f32 %v329_v52, %v297_v47  ;;  %v336_v54 = vadd.f32 %v332_v18, %v300_v32 }
  0xbd   :  { %v801_v63 = vpop.permute.xlu2 %411 }
  0xc4   :  { %v799_v62 = vpop.permute.xlu0 %360 }
  0xc5   :  { %v813_v11 = vpop.permute.xlu2 %458  ;;  %v369_v5 = vsel %vm368_vm13, %v799_v62, %v797_v60  ;;  %v371_v3 = vsel %vm368_vm13, %v797_v60, %v799_v62  ;;  %v287_v60 = vsel %vm283_vm12, %v793_v57, %v795_v59  ;;  %v334_v62 = vadd.f32 %v330_v37, %v298_v50  ;;  %v522_v37 = vld [vmem:[#allocation2 + $0x108] sm:$0xff] }
  0xc6   :  { %v378_v20 = vmul.f32 %v374_v58, %v369_v5  ;;  %v379_v21 = vmul.f32 %v375_v2, %v371_v3  ;;  %v295_v25 = vmul.f32 %v291_v7, %v287_v60  ;;  %v524_v60 = vld [vmem:[#allocation2 + $0x118] sm:$0xff] }
  0xc8   :  { %v382_v8 = vadd.f32 %v378_v20, %v333_v14  ;;  %v383_v28 = vadd.f32 %v379_v21, %v334_v62  ;;  %v299_v31 = vadd.f32 %v295_v25, %v250_v16 }
  0xca   :  { %v803_v0 = vpop.permute.xlu1 %362  ;;  %v335_v52 = vadd.f32 %v331_v6, %v299_v31 }
  0xcc   :  { %v805_v1 = vpop.permute.xlu0 %366 }
  0xcd   :  { %v838_v53 = vpop.permute.xlu2 %464  ;;  %v370_v35 = vsel %vm368_vm13, %v803_v0, %v805_v1  ;;  %v372_v36 = vsel %vm368_vm13, %v805_v1, %v803_v0 }
  0xce   :  { %v380_v0 = vmul.f32 %v376_v33, %v370_v35  ;;  %v381_v1 = vmul.f32 %v377_v34, %v372_v36 }
  0xd2   :  { %v410_v10 = vpop.permute.xlu1 %409 }
  0xd4   :  { %v414_v29 = vpop.permute.xlu0 %413 }
  0xd5   :  { %v418_v48 = vsel %vm417_vm14, %v410_v10, %v414_v29  ;;  %v420_v49 = vsel %vm417_vm14, %v414_v29, %v410_v10  ;;  %v472_v10 = vld [vmem:[#allocation2 + $0xe0] sm:$0xff]  ;;  %v512_v41 = vpop.permute.xlu2 %511 }
  0xd6   :  { %v427_v22 = vmul.f32 %v423_v4, %v418_v48  ;;  %v428_v23 = vmul.f32 %v424_v9, %v420_v49  ;;  %v474_v4 = vld [vmem:[#allocation2 + $0xf0] sm:$0xff]  ;;  %v475_v9 = vld [vmem:[#allocation2 + $0xf8] sm:$0xff] }
  0xd8   :  { %v431_v39 = vadd.f32 %v427_v22, %v382_v8 }
  0xda   :  { %v832_v46 = vpop.permute.xlu1 %415 }
  0xdb   :  { %v419_v43 = vsel %vm417_vm14, %v801_v63, %v832_v46  ;;  %v421_v44 = vsel %vm417_vm14, %v832_v46, %v801_v63  ;;  %v384_v63 = vadd.f32 %v380_v0, %v335_v52  ;;  %v385_v46 = vadd.f32 %v381_v1, %v336_v54 }
  0xdc   :  { %v429_v51 = vmul.f32 %v425_v40, %v419_v43  ;;  %v430_v58 = vmul.f32 %v426_v42, %v421_v44 }
  0xde   :  { %v433_v49 = vadd.f32 %v429_v51, %v384_v63  ;;  %v434_v7 = vadd.f32 %v430_v58, %v385_v46 }
  0xe0   :  { %v461_v15 = vpop.permute.xlu0 %460 }
  0xe1   :  { %v468_v6 = vsel %vm466_vm15, %v461_v15, %v838_v53  ;;  %v470_v48 = vsel %vm466_vm15, %v838_v53, %v461_v15 }
  0xe2   :  { %v463_v24 = vpop.permute.xlu1 %462  ;;  %v478_v62 = vmul.f32 %v474_v4, %v468_v6  ;;  %v479_v14 = vmul.f32 %v475_v9, %v470_v48 }
  0xe3   :  { %v467_v57 = vsel %vm466_vm15, %v813_v11, %v463_v24  ;;  %v469_v59 = vsel %vm466_vm15, %v463_v24, %v813_v11  ;;  %v432_v11 = vadd.f32 %v428_v23, %v383_v28 }
  0xe4   :  { %v476_v29 = vmul.f32 %v472_v10, %v467_v57  ;;  %v477_v30 = vmul.f32 %v473_v19, %v469_v59  ;;  %v482_v10 = vadd.f32 %v478_v62, %v433_v49  ;;  %v483_v19 = vadd.f32 %v479_v14, %v434_v7 }
  0xe6   :  { %v480_v38 = vadd.f32 %v476_v29, %v431_v39  ;;  %v481_v47 = vadd.f32 %v477_v30, %v432_v11 }
  0xe8   :  { %v508_v50 = vpop.permute.xlu0 %507 }
  0xe9   :  { %v516_v55 = vsel %vm515_vm0, %v508_v50, %v512_v41  ;;  %v518_v56 = vsel %vm515_vm0, %v512_v41, %v508_v50 }
  0xea   :  { %v525_v61 = vmul.f32 %v521_v45, %v516_v55  ;;  %v526_v2 = vmul.f32 %v522_v37, %v518_v56 }
  0xeb   :  { %v510_v12 = vpop.permute.xlu1 %509 }
  0xec   :  { %v529_v5 = vadd.f32 %v525_v61, %v480_v38  ;;  %v530_v3 = vadd.f32 %v526_v2, %v481_v47 }
  0xee   :  { %533 = vst [vmem:[#allocation5] sm:$0xff] %v529_v5 }
  0xef   :  { %534 = vst [vmem:[#allocation5 + $0x8] sm:$0xff] %v530_v3 }
  0xf0   :  { %v514_v16 = vpop.permute.xlu0 %513 }
  0xf1   :  { %v517_v17 = vsel %vm515_vm0, %v510_v12, %v514_v16  ;;  %v519_v18 = vsel %vm515_vm0, %v514_v16, %v510_v12 }
  0xf2   :  { %v527_v20 = vmul.f32 %v523_v13, %v517_v17  ;;  %v528_v53 = vmul.f32 %v524_v60, %v519_v18 }
  0xf4   :  { %v531_v15 = vadd.f32 %v527_v20, %v482_v10  ;;  %v532_v21 = vadd.f32 %v528_v53, %v483_v19 }
  0xf6   :  { %535 = vst [vmem:[#allocation5 + $0x10] sm:$0xff] %v531_v15 }
  0xf7   :  { %536 = vst [vmem:[#allocation5 + $0x18] sm:$0xff] %v532_v21 }
  0xf8   :  { %549 = dma.vmem_to_hbm [thread:$0]  %s542_s6, 512, %s544_s9, [#allocation4], %s623_s17, %s623_s17, %s624_s18  }
  0xf9   :  { %620 = dma.done.wait [#allocation4], 512  }
  0xfa   :  { %621 = vsyncadd [#allocation4], 4294966784 }
  0xfb   :  { %554 = vsyncpa [#allocation3], 1 }
  0xfc   :  { %555 = vsyncpa [#allocation4], 1 }

</bundles_post_ra>
